<compile_context>
chip_gen: v5e
topology: v5e:2x2
jax: 0.10.0
libtpu: 0.0.40
codegen_flags: <defaults>
</compile_context>

<pallas_src>
import math

import jax
import jax.numpy as jnp
from jax.experimental import pallas as pl
from jax.experimental.pallas import tpu as pltpu

LANE = 128      # TPU lane width: each channel dim padded to a multiple of this
SUBLANE = 8     # packed time (row) length padded to a multiple of this


def _round_up(n, m):
    return ((n + m - 1) // m) * m


def _cls_head_kernel(x_ref, mask_ref, w0_ref, b0_ref, w1_ref, b1_ref, wc_ref, bc_ref,
                     out_ref):
    """Fused 3-layer masked-conv head on one (batch, level) segment.

    x_ref:    (S, W_in)          bf16 raw features (time rows of one segment)
    mask_ref: (S, 1)             f32  MaskedConv1D mask (0 on padding / invalid rows)
    w*_ref:   (3, W_inL, W_outL) bf16 conv taps, k=0 <-> t-1, k=1 <-> t, k=2 <-> t+1
    b*_ref:   (1, W_outL)        f32
    out_ref:  (S, W_out)         f32  lane-dense logits (sliced to num_classes outside)
    """
    S = x_ref.shape[0]
    W_feat = w0_ref.shape[2]
    W_out = out_ref.shape[1]
    W_big = max(W_feat, W_out)

    # Segment-edge validity (Conv1d zero padding at t=0 / t=S-1; also kills roll wrap).
    rows = jax.lax.broadcasted_iota(jnp.int32, (S, 1), 0)
    lmask = (rows > 0).astype(jnp.float32)          # row 0 has no t-1 neighbour
    rmask = (rows < S - 1).astype(jnp.float32)      # last row has no t+1 neighbour

    # Hoisted lane-broadcast of the MaskedConv1D mask (bf16), reused by all three layers.
    mask_b = jnp.broadcast_to(mask_ref[...], (S, W_big)).astype(jnp.bfloat16)

    def conv3(h, w_ref, b_ref):
        # out[t] = h[t-1]@w0 + h[t]@w1 + h[t+1]@w2 + b
        #        = roll(h@w0, +1)[t] + (h@w1)[t] + roll(h@w2, -1)[t] + b
        # Three accumulating MXU dots (no im2col concat); rolls on f32 outputs (XLU).
        y0 = jnp.dot(h, w_ref[0], preferred_element_type=jnp.float32)
        y1 = jnp.dot(h, w_ref[1], preferred_element_type=jnp.float32)
        y2 = jnp.dot(h, w_ref[2], preferred_element_type=jnp.float32)
        acc = y1 + pltpu.roll(y0, 1, 0) * lmask + pltpu.roll(y2, S - 1, 0) * rmask
        return acc + b_ref[...]

    h = x_ref[...]                                                   # bf16 (S, W_in)
    h = (jnp.maximum(conv3(h, w0_ref, b0_ref), 0.0).astype(jnp.bfloat16)
         * mask_b[:, :W_feat])                                       # relu(conv*mask), bf16
    h = (jnp.maximum(conv3(h, w1_ref, b1_ref), 0.0).astype(jnp.bfloat16)
         * mask_b[:, :W_feat])
    out_ref[...] = conv3(h, wc_ref, bc_ref) * mask_b[:, :W_out]      # f32 logits


def _prep_conv_params(w, b, w_in_pad, w_out_pad):
    """(K, Cin, Cout)/(1, Cout) params -> ((K, w_in_pad, w_out_pad) bf16, (1, w_out_pad) f32)."""
    K, cin, cout = w.shape
    wp = jnp.pad(w, ((0, 0), (0, w_in_pad - cin), (0, w_out_pad - cout))).astype(jnp.bfloat16)
    bp = jnp.pad(b, ((0, 0), (0, w_out_pad - cout))).astype(jnp.float32)
    return wp, bp


@jax.jit
def cls_head_forward(fpn_feats, fpn_masks, w0, b0, w1, b1, wc, bc):
    """fpn_feats: list of (B, T_l, Cin) f32; fpn_masks: list of (B, T_l, 1) float.

    Returns a tuple of per-level logits (B, T_l, num_classes) f32.
    """
    assert len(fpn_feats) == len(fpn_masks)
    B, _, cin = fpn_feats[0].shape
    K, _, feat_dim = w0.shape
    num_classes = wc.shape[2]
    assert K == 3, "kernel specialized to the module default kernel_size=3 (pad=1)"

    L = len(fpn_feats)
    Ts = [int(f.shape[1]) for f in fpn_feats]

    # Per-layer lane widths (decoupled: cls matmul / output store only num_classes-wide).
    W_in = _round_up(cin, LANE)
    W_feat = _round_up(feat_dim, LANE)
    W_out = _round_up(num_classes, LANE)

    # One grid step per (batch, level) segment -> block boundaries coincide with segment
    # boundaries, so neighbour taps never cross a block edge.
    S_pad = _round_up(max(Ts), SUBLANE)
    num_segs = B * L
    R = num_segs * S_pad

    x_segs, m_segs = [], []
    for f, m, T in zip(fpn_feats, fpn_masks, Ts):
        x_segs.append(jnp.pad(f, ((0, 0), (0, S_pad - T), (0, W_in - cin)))
                      .astype(jnp.bfloat16))
        m_segs.append(jnp.pad(m.astype(jnp.float32), ((0, 0), (0, S_pad - T), (0, 0))))
    x_packed = jnp.stack(x_segs, axis=1).reshape(R, W_in)   # (B, L, S_pad, W_in) -> rows
    m_packed = jnp.stack(m_segs, axis=1).reshape(R, 1)

    # Conv weights to (K, W_in_layer, W_out_layer) bf16 once, outside the kernel.
    w0p, b0p = _prep_conv_params(w0, b0, W_in, W_feat)
    w1p, b1p = _prep_conv_params(w1, b1, W_feat, W_feat)
    wcp, bcp = _prep_conv_params(wc, bc, W_feat, W_out)

    # Explicit VMEM budget: double-buffered per-segment I/O + resident weights +
    # in-kernel f32/bf16 intermediates, floored at 32 MiB, capped below physical VMEM.
    io_bytes = S_pad * (W_in * 2 + 4 + W_out * 4)
    w_bytes = 2 * 3 * (W_in * W_feat + W_feat * W_feat + W_feat * W_out) \
        + 4 * (2 * W_feat + W_out)
    live_bytes = 8 * S_pad * max(W_in, W_feat, W_out) * 4
    vmem_limit = min(100 << 20,
                     max(32 << 20, 4 * io_bytes + 2 * w_bytes + live_bytes + (8 << 20)))

    out = pl.pallas_call(
        _cls_head_kernel,
        out_shape=jax.ShapeDtypeStruct((R, W_out), jnp.float32),
        grid_spec=pltpu.PrefetchScalarGridSpec(
            num_scalar_prefetch=0,
            grid=(num_segs,),
            in_specs=[
                pl.BlockSpec((S_pad, W_in), lambda s: (s, 0)),        # x        (per segment)
                pl.BlockSpec((S_pad, 1), lambda s: (s, 0)),           # mask     (per segment)
                pl.BlockSpec((3, W_in, W_feat), lambda s: (0, 0, 0)),   # w0  (resident)
                pl.BlockSpec((1, W_feat), lambda s: (0, 0)),            # b0
                pl.BlockSpec((3, W_feat, W_feat), lambda s: (0, 0, 0)), # w1  (resident)
                pl.BlockSpec((1, W_feat), lambda s: (0, 0)),            # b1
                pl.BlockSpec((3, W_feat, W_out), lambda s: (0, 0, 0)),  # wc  (resident)
                pl.BlockSpec((1, W_out), lambda s: (0, 0)),             # bc
            ],
            out_specs=pl.BlockSpec((S_pad, W_out), lambda s: (s, 0)),
        ),
        compiler_params=pltpu.CompilerParams(
            dimension_semantics=("parallel",),
            vmem_limit_bytes=int(vmem_limit),
        ),
    )(x_packed, m_packed, w0p, b0p, w1p, b1p, wcp, bcp)

    out = out.reshape(B, L, S_pad, W_out)
    return tuple(out[:, l, :T, :num_classes] for l, T in enumerate(Ts))


def init_params(key, input_dim, feat_dim, num_classes, kernel_size=3,
                prior_prob=0.01, empty_cls=()):
    """Deterministic synthetic parameters (weights in (K, Cin, Cout) layout; a torch
    Conv1d weight (Cout, Cin, K) maps here via transpose(2, 1, 0))."""
    k0, k1, k2 = jax.random.split(key, 3)
    scale = 0.1
    w0 = scale * jax.random.normal(k0, (kernel_size, input_dim, feat_dim), jnp.float32)
    w1 = scale * jax.random.normal(k1, (kernel_size, feat_dim, feat_dim), jnp.float32)
    wc = scale * jax.random.normal(k2, (kernel_size, feat_dim, num_classes), jnp.float32)
    b0 = jnp.zeros((1, feat_dim), jnp.float32)       # hidden MaskedConv1D bias init = 0
    b1 = jnp.zeros((1, feat_dim), jnp.float32)
    bias_value = -math.log((1 - prior_prob) / prior_prob)
    bc = jnp.full((1, num_classes), bias_value, jnp.float32)
    if len(empty_cls) > 0:
        empty_value = -math.log((1 - 1e-06) / 1e-06)
        bc = bc.at[0, jnp.array(list(empty_cls))].set(empty_value)
    return w0, b0, w1, b1, wc, bc


def ref_level(x, mask, w0, b0, w1, b1, wc, bc):
    """Pure-JAX reference (bf16 matmul operands, f32 accumulation, like the kernel)."""
    K = w0.shape[0]
    pad = K // 2
    T = x.shape[1]

    def conv(h, w, b):
        hp = jnp.pad(h, ((0, 0), (pad, pad), (0, 0))).astype(jnp.bfloat16)
        wb = w.astype(jnp.bfloat16)
        acc = sum(jnp.einsum('btc,cf->btf', hp[:, k:k + T, :], wb[k],
                             preferred_element_type=jnp.float32)
                  for k in range(K))
        return (acc + b[None].astype(jnp.float32)) * mask

    h = jax.nn.relu(conv(x, w0, b0))
    h = jax.nn.relu(conv(h, w1, b1))
    return conv(h, wc, bc)


if __name__ == "__main__":
    key = jax.random.PRNGKey(0)
    B, input_dim, feat_dim, num_classes = 2, 32, 32, 8
    Ts = [16, 8]  # two FPN levels

    params = init_params(key, input_dim, feat_dim, num_classes,
                         kernel_size=3, prior_prob=0.01, empty_cls=())

    fpn_feats, fpn_masks = [], []
    for i, T in enumerate(Ts):
        kf = jax.random.fold_in(key, 100 + i)
        x = jax.random.normal(kf, (B, T, input_dim), jnp.float32)
        lengths = jnp.array([T, max(T // 2, 1)], jnp.int32)
        m = (jnp.arange(T)[None, :] < lengths[:, None]).astype(jnp.float32)[..., None]
        fpn_feats.append(x)
        fpn_masks.append(m)

    # forward over all FPN levels -> tuple of logits, one per level (single fused kernel)
    out_logits = cls_head_forward(fpn_feats, fpn_masks, *params)
    for o in out_logits:
        jax.block_until_ready(o)

    # correctness check against the pure-JAX reference (bf16 matmuls, f32 accumulation)
    for x, m, o in zip(fpn_feats, fpn_masks, out_logits):
        r = ref_level(x, m, *params)
        assert o.shape == r.shape, (o.shape, r.shape)
        err = float(jnp.max(jnp.abs(o - r)))
        assert err < 1e-2, f"mismatch: max abs err {err}"

    print("KERNEL_OK")
</pallas_src>

<mosaic_0001>
module attributes {stable_mosaic.version = 11 : i64} {
  func.func @_cls_head_kernel(%arg0: i32, %arg1: memref<16x128xbf16, #tpu.memory_space<vmem>>, %arg2: memref<16x1xf32, #tpu.memory_space<vmem>>, %arg3: memref<3x128x128xbf16, #tpu.memory_space<vmem>>, %arg4: memref<1x128xf32, #tpu.memory_space<vmem>>, %arg5: memref<3x128x128xbf16, #tpu.memory_space<vmem>>, %arg6: memref<1x128xf32, #tpu.memory_space<vmem>>, %arg7: memref<3x128x128xbf16, #tpu.memory_space<vmem>>, %arg8: memref<1x128xf32, #tpu.memory_space<vmem>>, %arg9: memref<16x128xf32, #tpu.memory_space<vmem>>) attributes {dimension_semantics = [#tpu.dimension_semantics<parallel>], iteration_bounds = array<i64: 4>, scalar_prefetch = 0 : i64, scratch_operands = 0 : i64, tpu.core_type = #tpu.core_type<tc>, window_params = [{transform_indices = @transform_0, window_bounds = array<i64: 16, 128>}, {transform_indices = @transform_1, window_bounds = array<i64: 16, 1>}, {pipeline_mode = #tpu.pipeline_mode<synchronous>, transform_indices = @transform_2, window_bounds = array<i64: 3, 128, 128>}, {pipeline_mode = #tpu.pipeline_mode<synchronous>, transform_indices = @transform_3, window_bounds = array<i64: 1, 128>}, {pipeline_mode = #tpu.pipeline_mode<synchronous>, transform_indices = @transform_4, window_bounds = array<i64: 3, 128, 128>}, {pipeline_mode = #tpu.pipeline_mode<synchronous>, transform_indices = @transform_5, window_bounds = array<i64: 1, 128>}, {pipeline_mode = #tpu.pipeline_mode<synchronous>, transform_indices = @transform_6, window_bounds = array<i64: 3, 128, 128>}, {pipeline_mode = #tpu.pipeline_mode<synchronous>, transform_indices = @transform_7, window_bounds = array<i64: 1, 128>}, {transform_indices = @transform_8, window_bounds = array<i64: 16, 128>}]} {
    %0 = tpu.iota {dimensions = array<i32: 0>} : vector<16x1xi32>
    %c0_i32 = arith.constant 0 : i32
    %1 = vector.broadcast %c0_i32 : i32 to vector<16x1xi32>
    %2 = arith.cmpi sgt, %0, %1 : vector<16x1xi32>
    %3 = arith.extui %2 : vector<16x1xi1> to vector<16x1xi32>
    %4 = arith.sitofp %3 : vector<16x1xi32> to vector<16x1xf32>
    %c15_i32 = arith.constant 15 : i32
    %5 = vector.broadcast %c15_i32 : i32 to vector<16x1xi32>
    %6 = arith.cmpi slt, %0, %5 : vector<16x1xi32>
    %7 = arith.extui %6 : vector<16x1xi1> to vector<16x1xi32>
    %8 = arith.sitofp %7 : vector<16x1xi32> to vector<16x1xf32>
    %c0 = arith.constant 0 : index
    %c0_0 = arith.constant 0 : index
    %9 = vector.load %arg2[%c0, %c0_0] : memref<16x1xf32, #tpu.memory_space<vmem>>, vector<16x1xf32>
    %10 = vector.shape_cast %9 : vector<16x1xf32> to vector<16x1xf32>
    %11 = vector.broadcast %10 : vector<16x1xf32> to vector<16x128xf32>
    %12 = arith.truncf %11 : vector<16x128xf32> to vector<16x128xbf16>
    %c0_1 = arith.constant 0 : index
    %c0_2 = arith.constant 0 : index
    %13 = vector.load %arg1[%c0_1, %c0_2] : memref<16x128xbf16, #tpu.memory_space<vmem>>, vector<16x128xbf16>
    %c0_3 = arith.constant 0 : index
    %c0_4 = arith.constant 0 : index
    %c0_5 = arith.constant 0 : index
    %14 = vector.load %arg3[%c0_3, %c0_4, %c0_5] : memref<3x128x128xbf16, #tpu.memory_space<vmem>>, vector<1x128x128xbf16>
    %15 = vector.shape_cast %14 : vector<1x128x128xbf16> to vector<128x128xbf16>
    %cst = arith.constant dense<0.000000e+00> : vector<16x128xf32>
    %16 = tpu.matmul %13, %15, %cst {dimension_numbers = #tpu.dot_dimension_numbers<[1], [0], [0], [1], [0, 0, 1, 1], [], []>} : vector<16x128xbf16>, vector<128x128xbf16>, vector<16x128xf32> -> vector<16x128xf32>
    %c1 = arith.constant 1 : index
    %c0_6 = arith.constant 0 : index
    %c0_7 = arith.constant 0 : index
    %17 = vector.load %arg3[%c1, %c0_6, %c0_7] : memref<3x128x128xbf16, #tpu.memory_space<vmem>>, vector<1x128x128xbf16>
    %18 = vector.shape_cast %17 : vector<1x128x128xbf16> to vector<128x128xbf16>
    %cst_8 = arith.constant dense<0.000000e+00> : vector<16x128xf32>
    %19 = tpu.matmul %13, %18, %cst_8 {dimension_numbers = #tpu.dot_dimension_numbers<[1], [0], [0], [1], [0, 0, 1, 1], [], []>} : vector<16x128xbf16>, vector<128x128xbf16>, vector<16x128xf32> -> vector<16x128xf32>
    %c2 = arith.constant 2 : index
    %c0_9 = arith.constant 0 : index
    %c0_10 = arith.constant 0 : index
    %20 = vector.load %arg3[%c2, %c0_9, %c0_10] : memref<3x128x128xbf16, #tpu.memory_space<vmem>>, vector<1x128x128xbf16>
    %21 = vector.shape_cast %20 : vector<1x128x128xbf16> to vector<128x128xbf16>
    %cst_11 = arith.constant dense<0.000000e+00> : vector<16x128xf32>
    %22 = tpu.matmul %13, %21, %cst_11 {dimension_numbers = #tpu.dot_dimension_numbers<[1], [0], [0], [1], [0, 0, 1, 1], [], []>} : vector<16x128xbf16>, vector<128x128xbf16>, vector<16x128xf32> -> vector<16x128xf32>
    %c1_i32 = arith.constant 1 : i32
    %23 = tpu.dynamic_rotate %16 by %c1_i32 dim 0 : vector<16x128xf32>, i32 -> vector<16x128xf32>
    %24 = vector.broadcast %4 : vector<16x1xf32> to vector<16x128xf32>
    %25 = arith.mulf %23, %24 : vector<16x128xf32>
    %26 = arith.addf %19, %25 : vector<16x128xf32>
    %c15_i32_12 = arith.constant 15 : i32
    %27 = tpu.dynamic_rotate %22 by %c15_i32_12 dim 0 : vector<16x128xf32>, i32 -> vector<16x128xf32>
    %28 = vector.broadcast %8 : vector<16x1xf32> to vector<16x128xf32>
    %29 = arith.mulf %27, %28 : vector<16x128xf32>
    %30 = arith.addf %26, %29 : vector<16x128xf32>
    %c0_13 = arith.constant 0 : index
    %c0_14 = arith.constant 0 : index
    %31 = vector.load %arg4[%c0_13, %c0_14] : memref<1x128xf32, #tpu.memory_space<vmem>>, vector<1x128xf32>
    %32 = vector.broadcast %31 : vector<1x128xf32> to vector<16x128xf32>
    %33 = arith.addf %30, %32 : vector<16x128xf32>
    %cst_15 = arith.constant 0.000000e+00 : f32
    %34 = vector.broadcast %cst_15 : f32 to vector<16x128xf32>
    %35 = arith.maximumf %33, %34 : vector<16x128xf32>
    %36 = arith.truncf %35 : vector<16x128xf32> to vector<16x128xbf16>
    %37 = arith.mulf %36, %12 : vector<16x128xbf16>
    %c0_16 = arith.constant 0 : index
    %c0_17 = arith.constant 0 : index
    %c0_18 = arith.constant 0 : index
    %38 = vector.load %arg5[%c0_16, %c0_17, %c0_18] : memref<3x128x128xbf16, #tpu.memory_space<vmem>>, vector<1x128x128xbf16>
    %39 = vector.shape_cast %38 : vector<1x128x128xbf16> to vector<128x128xbf16>
    %cst_19 = arith.constant dense<0.000000e+00> : vector<16x128xf32>
    %40 = tpu.matmul %37, %39, %cst_19 {dimension_numbers = #tpu.dot_dimension_numbers<[1], [0], [0], [1], [0, 0, 1, 1], [], []>} : vector<16x128xbf16>, vector<128x128xbf16>, vector<16x128xf32> -> vector<16x128xf32>
    %c1_20 = arith.constant 1 : index
    %c0_21 = arith.constant 0 : index
    %c0_22 = arith.constant 0 : index
    %41 = vector.load %arg5[%c1_20, %c0_21, %c0_22] : memref<3x128x128xbf16, #tpu.memory_space<vmem>>, vector<1x128x128xbf16>
    %42 = vector.shape_cast %41 : vector<1x128x128xbf16> to vector<128x128xbf16>
    %cst_23 = arith.constant dense<0.000000e+00> : vector<16x128xf32>
    %43 = tpu.matmul %37, %42, %cst_23 {dimension_numbers = #tpu.dot_dimension_numbers<[1], [0], [0], [1], [0, 0, 1, 1], [], []>} : vector<16x128xbf16>, vector<128x128xbf16>, vector<16x128xf32> -> vector<16x128xf32>
    %c2_24 = arith.constant 2 : index
    %c0_25 = arith.constant 0 : index
    %c0_26 = arith.constant 0 : index
    %44 = vector.load %arg5[%c2_24, %c0_25, %c0_26] : memref<3x128x128xbf16, #tpu.memory_space<vmem>>, vector<1x128x128xbf16>
    %45 = vector.shape_cast %44 : vector<1x128x128xbf16> to vector<128x128xbf16>
    %cst_27 = arith.constant dense<0.000000e+00> : vector<16x128xf32>
    %46 = tpu.matmul %37, %45, %cst_27 {dimension_numbers = #tpu.dot_dimension_numbers<[1], [0], [0], [1], [0, 0, 1, 1], [], []>} : vector<16x128xbf16>, vector<128x128xbf16>, vector<16x128xf32> -> vector<16x128xf32>
    %c1_i32_28 = arith.constant 1 : i32
    %47 = tpu.dynamic_rotate %40 by %c1_i32_28 dim 0 : vector<16x128xf32>, i32 -> vector<16x128xf32>
    %48 = vector.broadcast %4 : vector<16x1xf32> to vector<16x128xf32>
    %49 = arith.mulf %47, %48 : vector<16x128xf32>
    %50 = arith.addf %43, %49 : vector<16x128xf32>
    %c15_i32_29 = arith.constant 15 : i32
    %51 = tpu.dynamic_rotate %46 by %c15_i32_29 dim 0 : vector<16x128xf32>, i32 -> vector<16x128xf32>
    %52 = vector.broadcast %8 : vector<16x1xf32> to vector<16x128xf32>
    %53 = arith.mulf %51, %52 : vector<16x128xf32>
    %54 = arith.addf %50, %53 : vector<16x128xf32>
    %c0_30 = arith.constant 0 : index
    %c0_31 = arith.constant 0 : index
    %55 = vector.load %arg6[%c0_30, %c0_31] : memref<1x128xf32, #tpu.memory_space<vmem>>, vector<1x128xf32>
    %56 = vector.broadcast %55 : vector<1x128xf32> to vector<16x128xf32>
    %57 = arith.addf %54, %56 : vector<16x128xf32>
    %cst_32 = arith.constant 0.000000e+00 : f32
    %58 = vector.broadcast %cst_32 : f32 to vector<16x128xf32>
    %59 = arith.maximumf %57, %58 : vector<16x128xf32>
    %60 = arith.truncf %59 : vector<16x128xf32> to vector<16x128xbf16>
    %61 = arith.mulf %60, %12 : vector<16x128xbf16>
    %c0_33 = arith.constant 0 : index
    %c0_34 = arith.constant 0 : index
    %c0_35 = arith.constant 0 : index
    %62 = vector.load %arg7[%c0_33, %c0_34, %c0_35] : memref<3x128x128xbf16, #tpu.memory_space<vmem>>, vector<1x128x128xbf16>
    %63 = vector.shape_cast %62 : vector<1x128x128xbf16> to vector<128x128xbf16>
    %cst_36 = arith.constant dense<0.000000e+00> : vector<16x128xf32>
    %64 = tpu.matmul %61, %63, %cst_36 {dimension_numbers = #tpu.dot_dimension_numbers<[1], [0], [0], [1], [0, 0, 1, 1], [], []>} : vector<16x128xbf16>, vector<128x128xbf16>, vector<16x128xf32> -> vector<16x128xf32>
    %c1_37 = arith.constant 1 : index
    %c0_38 = arith.constant 0 : index
    %c0_39 = arith.constant 0 : index
    %65 = vector.load %arg7[%c1_37, %c0_38, %c0_39] : memref<3x128x128xbf16, #tpu.memory_space<vmem>>, vector<1x128x128xbf16>
    %66 = vector.shape_cast %65 : vector<1x128x128xbf16> to vector<128x128xbf16>
    %cst_40 = arith.constant dense<0.000000e+00> : vector<16x128xf32>
    %67 = tpu.matmul %61, %66, %cst_40 {dimension_numbers = #tpu.dot_dimension_numbers<[1], [0], [0], [1], [0, 0, 1, 1], [], []>} : vector<16x128xbf16>, vector<128x128xbf16>, vector<16x128xf32> -> vector<16x128xf32>
    %c2_41 = arith.constant 2 : index
    %c0_42 = arith.constant 0 : index
    %c0_43 = arith.constant 0 : index
    %68 = vector.load %arg7[%c2_41, %c0_42, %c0_43] : memref<3x128x128xbf16, #tpu.memory_space<vmem>>, vector<1x128x128xbf16>
    %69 = vector.shape_cast %68 : vector<1x128x128xbf16> to vector<128x128xbf16>
    %cst_44 = arith.constant dense<0.000000e+00> : vector<16x128xf32>
    %70 = tpu.matmul %61, %69, %cst_44 {dimension_numbers = #tpu.dot_dimension_numbers<[1], [0], [0], [1], [0, 0, 1, 1], [], []>} : vector<16x128xbf16>, vector<128x128xbf16>, vector<16x128xf32> -> vector<16x128xf32>
    %c1_i32_45 = arith.constant 1 : i32
    %71 = tpu.dynamic_rotate %64 by %c1_i32_45 dim 0 : vector<16x128xf32>, i32 -> vector<16x128xf32>
    %72 = vector.broadcast %4 : vector<16x1xf32> to vector<16x128xf32>
    %73 = arith.mulf %71, %72 : vector<16x128xf32>
    %74 = arith.addf %67, %73 : vector<16x128xf32>
    %c15_i32_46 = arith.constant 15 : i32
    %75 = tpu.dynamic_rotate %70 by %c15_i32_46 dim 0 : vector<16x128xf32>, i32 -> vector<16x128xf32>
    %76 = vector.broadcast %8 : vector<16x1xf32> to vector<16x128xf32>
    %77 = arith.mulf %75, %76 : vector<16x128xf32>
    %78 = arith.addf %74, %77 : vector<16x128xf32>
    %c0_47 = arith.constant 0 : index
    %c0_48 = arith.constant 0 : index
    %79 = vector.load %arg8[%c0_47, %c0_48] : memref<1x128xf32, #tpu.memory_space<vmem>>, vector<1x128xf32>
    %80 = vector.broadcast %79 : vector<1x128xf32> to vector<16x128xf32>
    %81 = arith.addf %78, %80 : vector<16x128xf32>
    %82 = arith.extf %12 : vector<16x128xbf16> to vector<16x128xf32>
    %83 = arith.mulf %81, %82 : vector<16x128xf32>
    %c0_49 = arith.constant 0 : index
    %c0_50 = arith.constant 0 : index
    %84 = vector.load %arg9[%c0_49, %c0_50] : memref<16x128xf32, #tpu.memory_space<vmem>>, vector<16x128xf32>
    tpu.vector_store %arg9[%c0_49, %c0_50], %83 {strides = array<i32>} : memref<16x128xf32, #tpu.memory_space<vmem>>, vector<16x128xf32>,
    return
  }
  func.func @transform_0(%arg0: i32) -> (i32, i32) {
    %c0_i32 = arith.constant 0 : i32
    %c0_i32_0 = arith.constant 0 : i32
    return %arg0, %c0_i32 : i32, i32
  }
  func.func @transform_1(%arg0: i32) -> (i32, i32) {
    %c0_i32 = arith.constant 0 : i32
    %c0_i32_0 = arith.constant 0 : i32
    return %arg0, %c0_i32 : i32, i32
  }
  func.func @transform_2(%arg0: i32) -> (i32, i32, i32) {
    %c0_i32 = arith.constant 0 : i32
    %c0_i32_0 = arith.constant 0 : i32
    %c0_i32_1 = arith.constant 0 : i32
    %c0_i32_2 = arith.constant 0 : i32
    return %c0_i32, %c0_i32_0, %c0_i32_1 : i32, i32, i32
  }
  func.func @transform_3(%arg0: i32) -> (i32, i32) {
    %c0_i32 = arith.constant 0 : i32
    %c0_i32_0 = arith.constant 0 : i32
    %c0_i32_1 = arith.constant 0 : i32
    return %c0_i32, %c0_i32_0 : i32, i32
  }
  func.func @transform_4(%arg0: i32) -> (i32, i32, i32) {
    %c0_i32 = arith.constant 0 : i32
    %c0_i32_0 = arith.constant 0 : i32
    %c0_i32_1 = arith.constant 0 : i32
    %c0_i32_2 = arith.constant 0 : i32
    return %c0_i32, %c0_i32_0, %c0_i32_1 : i32, i32, i32
  }
  func.func @transform_5(%arg0: i32) -> (i32, i32) {
    %c0_i32 = arith.constant 0 : i32
    %c0_i32_0 = arith.constant 0 : i32
    %c0_i32_1 = arith.constant 0 : i32
    return %c0_i32, %c0_i32_0 : i32, i32
  }
  func.func @transform_6(%arg0: i32) -> (i32, i32, i32) {
    %c0_i32 = arith.constant 0 : i32
    %c0_i32_0 = arith.constant 0 : i32
    %c0_i32_1 = arith.constant 0 : i32
    %c0_i32_2 = arith.constant 0 : i32
    return %c0_i32, %c0_i32_0, %c0_i32_1 : i32, i32, i32
  }
  func.func @transform_7(%arg0: i32) -> (i32, i32) {
    %c0_i32 = arith.constant 0 : i32
    %c0_i32_0 = arith.constant 0 : i32
    %c0_i32_1 = arith.constant 0 : i32
    return %c0_i32, %c0_i32_0 : i32, i32
  }
  func.func @transform_8(%arg0: i32) -> (i32, i32) {
    %c0_i32 = arith.constant 0 : i32
    %c0_i32_0 = arith.constant 0 : i32
    return %arg0, %c0_i32 : i32, i32
  }
}

</mosaic_0001>

<bundles_post_ra>
// kernel: cls_head_forward.1
= control target key start
LH: loop header
LB: loop body
LE: loop exit
PB: predicated region body
PF: predicated region fallthrough
CT: control target
= control target key end

     0   :  { %s1780_s27 = smov 0   ;;  %s2083_s0 = inlined_call_operand.vmem [shape: bf16[64,128], index: 0, kind: input, shape index: {}]   ;;  %s2084_s1 = inlined_call_operand.vmem [shape: f32[64,1], index: 1, kind: input, shape index: {}]   ;;  %s2085_s2 = inlined_call_operand.vmem [shape: bf16[3,128,128], index: 2, kind: input, shape index: {}]   ;;  %s2086_s3 = inlined_call_operand.vmem [shape: f32[1,128], index: 3, kind: input, shape index: {}]   ;;  %s2087_s4 = inlined_call_operand.vmem [shape: bf16[3,128,128], index: 4, kind: input, shape index: {}]   ;;  %s2088_s5 = inlined_call_operand.vmem [shape: f32[1,128], index: 5, kind: input, shape index: {}]   ;;  %s2089_s6 = inlined_call_operand.vmem [shape: bf16[3,128,128], index: 6, kind: input, shape index: {}]   ;;  %s2090_s7 = inlined_call_operand.vmem [shape: f32[1,128], index: 7, kind: input, shape index: {}]   ;;  %s2091_s8 = inlined_call_operand.vmem [shape: f32[64,128], index: 8, kind: output, shape index: {}]  }
   0x1 LB: > { %s1230_s28 = sadd.s32 4294967295, %s1731_s27   ;;  %p1234_p0 = scmp.ge.s32.totalorder %s1731_s27, 1  ;;  %s1731_s27 = sphi %s1780_s27, %s18_s27  }
   0x2   : > { %p274_p1 = scmp.lt.s32.totalorder %s1731_s27, 5 }
   0x4   : > { %p275_p2 = pnand %p1234_p0, %p274_p1 }
   0x5   : > { %s1235_s13 = sshll.u32 (!%p275_p2), %s1230_s28, 1 }
   0x6   : > { %278 = sbr.rel (%p275_p2) target bundleno = 516 (0x204), region = 52  ;;  %p314_p3 = scmp.lt.s32.totalorder (!%p275_p2), %s1235_s13, 7 }
   0xb   : > { %v1641_v0 = vld [vmem:[%s2085_s2 + $0x38] sm:$0xff]  ;;  %v1640_v3 = vld [vmem:[%s2085_s2 + $0x30] sm:$0xff]  ;;  %s2093_s13 = smov (!%p314_p3, %s1235_s13), 7  ;;  %v1733_v6 = vmov 0   ;;  %v1639_v7 = vld [vmem:[%s2085_s2 + $0x28] sm:$0xff]  ;;  %v331_v53 = vlaneseq  ;;  %v1734_v62 = vmov 0.0  }
   0xc   : > { %v1657_v1 = vld [vmem:[%s2085_s2 + $0xb8] sm:$0xff]  ;;  %432 = vmatpush.bf16.msra.mxu0 %v1641_v0  ;;  %v1656_v4 = vld [vmem:[%s2085_s2 + $0xb0] sm:$0xff]  ;;  %1716 = vset.pattern.permute.xlu0 %v1733_v6  ;;  %s1238_s20 = sshll.u32 %s2093_s13, 3  ;;  %v1655_v8 = vld [vmem:[%s2085_s2 + $0xa8] sm:$0xff]  ;;  %s1236_s15 = sshll.u32 %s2093_s13, 2 }
   0xd   : > { %v1649_v2 = vld [vmem:[%s2085_s2 + $0x78] sm:$0xff]  ;;  %528 = vmatpush.bf16.msra.mxu1 %v1657_v1  ;;  %v1648_v5 = vld [vmem:[%s2085_s2 + $0x70] sm:$0xff]  ;;  %s323_s28 = scalar_lea.vmem %s2084_s1, %s1238_s20  ;;  %v1647_v9 = vld [vmem:[%s2085_s2 + $0x68] sm:$0xff]  ;;  %s317_s23 = scalar_lea.vmem %s2083_s0, %s1236_s15  ;;  %v1944_v56 = vshrl.u32 %v331_v53, 7 }
   0xe   : > { %597 = vmatpush.bf16.msra.mxu2 %v1649_v2  ;;  %v346_v10 = vld [vmem:[%s323_s28] sm:$0xff]  ;;  %v347_v11 = vld [vmem:[%s323_s28 + $0x8] sm:$0xff]  ;;  %v1637_v16 = vld [vmem:[%s2085_s2 + $0x18] sm:$0xff]  ;;  %s329_s15 = scalar_lea.vmem %s2091_s8, %s1238_s20 }
   0xf   : > { %v1717_v12 = vpack.i.bf16 %v347_v11, %v346_v10  ;;  %v1638_v13 = vld [vmem:[%s2085_s2 + $0x20] sm:$0xff]  ;;  %v1653_v17 = vld [vmem:[%s2085_s2 + $0x98] sm:$0xff]  ;;  %v1636_v19 = vld [vmem:[%s2085_s2 + $0x10] sm:$0xff]  ;;  %vm334_vm0 = vcmp.gt.s32.totalorder %v1944_v56, 0  ;;  %v333_v57 = vadd.s32 8, %v1944_v56  ;;  %vm544_vm1 = vcmp.lt.s32.totalorder %v1944_v56, 1 }
  0x10   : > { %433 = vmatpush.bf16.msra.mxu0 %v1640_v3  ;;  %v1654_v14 = vld [vmem:[%s2085_s2 + $0xa0] sm:$0xff]  ;;  %v1645_v18 = vld [vmem:[%s2085_s2 + $0x58] sm:$0xff]  ;;  %v1652_v20 = vld [vmem:[%s2085_s2 + $0x90] sm:$0xff]  ;;  %v1949_v63 = vsel %vm334_vm0, 1.0, %v1734_v62  ;;  %vm613_vm2 = vcmp.lt.s32.totalorder %v1944_v56, 7 }
  0x11   : > { %529 = vmatpush.bf16.msra.mxu1 %v1656_v4  ;;  %v1646_v15 = vld [vmem:[%s2085_s2 + $0x60] sm:$0xff]  ;;  %1718 = vperm.xlu0 %1716, %v1717_v12   ;;  %v1644_v21 = vld [vmem:[%s2085_s2 + $0x50] sm:$0xff]  ;;  %v1635_v22 = vld [vmem:[%s2085_s2 + $0x8] sm:$0xff]  ;;  %vm341_vm3 = vcmp.lt.s32.totalorder %v333_v57, 15 }
  0x12   : > { %598 = vmatpush.bf16.msra.mxu2 %v1648_v5  ;;  %v1651_v23 = vld [vmem:[%s2085_s2 + $0x88] sm:$0xff]  ;;  %v1634_v25 = vld [vmem:[%s2085_s2] sm:$0xff]  ;;  %v1665_v29 = vld [vmem:[%s2087_s4 + $0x38] sm:$0xff] }
  0x13   : > { %v1643_v24 = vld [vmem:[%s2085_s2 + $0x48] sm:$0xff]  ;;  %v1650_v26 = vld [vmem:[%s2085_s2 + $0x80] sm:$0xff]  ;;  %v1681_v30 = vld [vmem:[%s2087_s4 + $0xb8] sm:$0xff]  ;;  %701 = vmatpush.bf16.msra.mxu3 %v1665_v29 }
  0x14   : > { %434 = vmatpush.bf16.msra.mxu0 %v1639_v7  ;;  %v1642_v27 = vld [vmem:[%s2085_s2 + $0x40] sm:$0xff]  ;;  %v1673_v31 = vld [vmem:[%s2087_s4 + $0x78] sm:$0xff]  ;;  %v1664_v32 = vld [vmem:[%s2087_s4 + $0x30] sm:$0xff]  ;;  %v1957_v7 = vsel %vm341_vm3, 1.0, %v1734_v62 }
  0x15   : > { %530 = vmatpush.bf16.msra.mxu1 %v1655_v8  ;;  %v1633_v28 = vld [vmem:[%s317_s23] sm:$0xff]  ;;  %v1680_v33 = vld [vmem:[%s2087_s4 + $0xb0] sm:$0xff]  ;;  %v1663_v35 = vld [vmem:[%s2087_s4 + $0x28] sm:$0xff] }
  0x16   : > { %599 = vmatpush.bf16.msra.mxu2 %v1647_v9  ;;  %v1672_v34 = vld [vmem:[%s2087_s4 + $0x70] sm:$0xff]  ;;  %v1679_v36 = vld [vmem:[%s2087_s4 + $0xa8] sm:$0xff]  ;;  %v1662_v38 = vld [vmem:[%s2087_s4 + $0x20] sm:$0xff] }
  0x17   : > { %702 = vmatpush.bf16.msra.mxu3 %v1664_v32  ;;  %v1671_v37 = vld [vmem:[%s2087_s4 + $0x68] sm:$0xff]  ;;  %v1678_v39 = vld [vmem:[%s2087_s4 + $0xa0] sm:$0xff]  ;;  %v1661_v41 = vld [vmem:[%s2087_s4 + $0x18] sm:$0xff] }
  0x18   : > { %435 = vmatpush.bf16.msra.mxu0 %v1638_v13  ;;  %v1670_v40 = vld [vmem:[%s2087_s4 + $0x60] sm:$0xff]  ;;  %v1677_v42 = vld [vmem:[%s2087_s4 + $0x98] sm:$0xff]  ;;  %v1660_v44 = vld [vmem:[%s2087_s4 + $0x10] sm:$0xff] }
  0x19   : > { %531 = vmatpush.bf16.msra.mxu1 %v1654_v14  ;;  %v1669_v43 = vld [vmem:[%s2087_s4 + $0x58] sm:$0xff]  ;;  %v1676_v45 = vld [vmem:[%s2087_s4 + $0x90] sm:$0xff]  ;;  %v1659_v47 = vld [vmem:[%s2087_s4 + $0x8] sm:$0xff] }
  0x1a   : > { %600 = vmatpush.bf16.msra.mxu2 %v1646_v15  ;;  %v1668_v46 = vld [vmem:[%s2087_s4 + $0x50] sm:$0xff]  ;;  %v1675_v48 = vld [vmem:[%s2087_s4 + $0x88] sm:$0xff]  ;;  %v1658_v50 = vld [vmem:[%s2087_s4] sm:$0xff] }
  0x1b   : > { %703 = vmatpush.bf16.msra.mxu3 %v1663_v35  ;;  %v1667_v49 = vld [vmem:[%s2087_s4 + $0x48] sm:$0xff]  ;;  %v1674_v51 = vld [vmem:[%s2087_s4 + $0x80] sm:$0xff]  ;;  %v1705_v35 = vld [vmem:[%s2089_s6 + $0xb8] sm:$0xff] }
  0x1c   : > { %436 = vmatpush.bf16.msra.mxu0 %v1637_v16  ;;  %v1666_v52 = vld [vmem:[%s2087_s4 + $0x40] sm:$0xff]  ;;  %v1699_v53 = vld [vmem:[%s2089_s6 + $0x88] sm:$0xff] }
  0x1d   : > { %532 = vmatpush.bf16.msra.mxu1 %v1653_v17  ;;  %v1722_v9 = vld [vmem:[%s2086_s3] ss:$0 sm:$0xff] }
  0x1e   : > { %601 = vmatpush.bf16.msra.mxu2 %v1645_v18  ;;  %v1698_v57 = vld [vmem:[%s2089_s6 + $0x80] sm:$0xff] }
  0x1f   : > { %704 = vmatpush.bf16.msra.mxu3 %v1662_v38  ;;  %v1704_v38 = vld [vmem:[%s2089_s6 + $0xb0] sm:$0xff] }
  0x20   : > { %437 = vmatpush.bf16.msra.mxu0 %v1636_v19 }
  0x21   : > { %533 = vmatpush.bf16.msra.mxu1 %v1652_v20 }
  0x22   : > { %602 = vmatpush.bf16.msra.mxu2 %v1644_v21 }
  0x23   : > { %705 = vmatpush.bf16.msra.mxu3 %v1661_v41  ;;  %v1703_v41 = vld [vmem:[%s2089_s6 + $0xa8] sm:$0xff] }
  0x24   : > { %438 = vmatpush.bf16.msra.mxu0 %v1635_v22 }
  0x25   : > { %534 = vmatpush.bf16.msra.mxu1 %v1651_v23 }
  0x26   : > { %603 = vmatpush.bf16.msra.mxu2 %v1643_v24 }
  0x27   : > { %706 = vmatpush.bf16.msra.mxu3 %v1660_v44  ;;  %v1702_v44 = vld [vmem:[%s2089_s6 + $0xa0] sm:$0xff] }
  0x28   : > { %439 = vmatpush.bf16.msra.mxu0 %v1634_v25 }
  0x29   : > { %535 = vmatpush.bf16.msra.mxu1 %v1650_v26 }
  0x2a   : > { %604 = vmatpush.bf16.msra.mxu2 %v1642_v27 }
  0x2b   : > { %440 = vmatmul.bf16.vlgmr.msra.gmra.mxu0 %v1633_v28  ;;  %707 = vmatpush.bf16.msra.mxu3 %v1659_v47  ;;  %v1701_v47 = vld [vmem:[%s2089_s6 + $0x98] sm:$0xff] }
  0x2c   : > { %536 = vmatmul.bf16.vlgmr.msra.gmra.mxu1 %v1633_v28  ;;  %797 = vmatpush.bf16.msrb.mxu0 %v1681_v30 }
  0x2d   : > { %605 = vmatmul.bf16.vlgmr.msra.gmra.mxu2 %v1633_v28  ;;  %865 = vmatpush.bf16.msrb.mxu1 %v1673_v31 }
  0x2f   : > { %708 = vmatpush.bf16.msra.mxu3 %v1658_v50  ;;  %v1700_v50 = vld [vmem:[%s2089_s6 + $0x90] sm:$0xff] }
  0x30   : > { %798 = vmatpush.bf16.msrb.mxu0 %v1680_v33 }
  0x31   : > { %866 = vmatpush.bf16.msrb.mxu1 %v1672_v34  ;;  %v1689_v34 = vld [vmem:[%s2089_s6 + $0x38] sm:$0xff] }
  0x32   : > { %966 = vmatpush.bf16.msrb.mxu2 %v1689_v34 }
  0x33   : > { %1062 = vmatpush.bf16.msrb.mxu3 %v1705_v35 }
  0x34   : > { %799 = vmatpush.bf16.msrb.mxu0 %v1679_v36  ;;  %v1697_v36 = vld [vmem:[%s2089_s6 + $0x78] sm:$0xff] }
  0x35   : > { %867 = vmatpush.bf16.msrb.mxu1 %v1671_v37  ;;  %v1688_v37 = vld [vmem:[%s2089_s6 + $0x30] sm:$0xff] }
  0x36   : > { %967 = vmatpush.bf16.msrb.mxu2 %v1688_v37 }
  0x37   : > { %1063 = vmatpush.bf16.msrb.mxu3 %v1704_v38 }
  0x38   : > { %800 = vmatpush.bf16.msrb.mxu0 %v1678_v39  ;;  %v1696_v39 = vld [vmem:[%s2089_s6 + $0x70] sm:$0xff] }
  0x39   : > { %868 = vmatpush.bf16.msrb.mxu1 %v1670_v40  ;;  %v1687_v40 = vld [vmem:[%s2089_s6 + $0x28] sm:$0xff] }
  0x3a   : > { %968 = vmatpush.bf16.msrb.mxu2 %v1687_v40 }
  0x3b   : > { %1064 = vmatpush.bf16.msrb.mxu3 %v1703_v41 }
  0x3c   : > { %801 = vmatpush.bf16.msrb.mxu0 %v1677_v42  ;;  %v1695_v42 = vld [vmem:[%s2089_s6 + $0x68] sm:$0xff] }
  0x3d   : > { %869 = vmatpush.bf16.msrb.mxu1 %v1669_v43  ;;  %v1686_v43 = vld [vmem:[%s2089_s6 + $0x20] sm:$0xff] }
  0x3e   : > { %969 = vmatpush.bf16.msrb.mxu2 %v1686_v43 }
  0x3f   : > { %1065 = vmatpush.bf16.msrb.mxu3 %v1702_v44 }
  0x40   : > { %802 = vmatpush.bf16.msrb.mxu0 %v1676_v45  ;;  %v1694_v45 = vld [vmem:[%s2089_s6 + $0x60] sm:$0xff] }
  0x41   : > { %870 = vmatpush.bf16.msrb.mxu1 %v1668_v46  ;;  %v1685_v46 = vld [vmem:[%s2089_s6 + $0x18] sm:$0xff] }
  0x42   : > { %970 = vmatpush.bf16.msrb.mxu2 %v1685_v46 }
  0x43   : > { %1066 = vmatpush.bf16.msrb.mxu3 %v1701_v47  ;;  %v1724_v47 = vld [vmem:[%s2090_s7] ss:$0 sm:$0xff] }
  0x44   : > { %803 = vmatpush.bf16.msrb.mxu0 %v1675_v48  ;;  %v1693_v48 = vld [vmem:[%s2089_s6 + $0x58] sm:$0xff] }
  0x45   : > { %871 = vmatpush.bf16.msrb.mxu1 %v1667_v49  ;;  %v1684_v49 = vld [vmem:[%s2089_s6 + $0x10] sm:$0xff] }
  0x46   : > { %971 = vmatpush.bf16.msrb.mxu2 %v1684_v49 }
  0x47   : > { %1067 = vmatpush.bf16.msrb.mxu3 %v1700_v50 }
  0x48   : > { %804 = vmatpush.bf16.msrb.mxu0 %v1674_v51  ;;  %v1692_v51 = vld [vmem:[%s2089_s6 + $0x50] sm:$0xff] }
  0x49   : > { %872 = vmatpush.bf16.msrb.mxu1 %v1666_v52  ;;  %v1683_v52 = vld [vmem:[%s2089_s6 + $0x8] sm:$0xff] }
  0x4a   : > { %972 = vmatpush.bf16.msrb.mxu2 %v1683_v52 }
  0x4b   : > { %1068 = vmatpush.bf16.msrb.mxu3 %v1699_v53 }
  0x4c   : > { %1130 = vmatpush.bf16.msra.mxu0 %v1697_v36 }
  0x4f   : > { %1069 = vmatpush.bf16.msrb.mxu3 %v1698_v57 }
  0x50   : > { %1131 = vmatpush.bf16.msra.mxu0 %v1696_v39 }
  0x54   : > { %1132 = vmatpush.bf16.msra.mxu0 %v1695_v42 }
  0x58   : > { %1133 = vmatpush.bf16.msra.mxu0 %v1694_v45 }
  0x5c   : > { %1134 = vmatpush.bf16.msra.mxu0 %v1693_v48 }
  0x60   : > { %1135 = vmatpush.bf16.msra.mxu0 %v1692_v51 }
  0x83   : > { %v1719_v4 = vpop.permute.xlu0 %1718 }
  0x84   : > { %v1720_v10 = vunpack.i.l.bf16 %v1719_v4  ;;  %v1721_v17 = vunpack.i.h.bf16 %v1719_v4 }
  0x86   : > { %v358_v20 = vpack.c.bf16 %v1720_v10, %v1720_v10  ;;  %v359_v22 = vpack.c.bf16 %v1721_v17, %v1721_v17 }
  0x88   : > { %v1967_v25 = vunpack.c.l.bf16 %v358_v20  ;;  %v1969_v28 = vunpack.c.l.bf16 %v359_v22 }
  0xa8   : > { %v441_v54 = vpop.f32.mrf.mxu0 }
  0xa9   : > { %v537_v55 = vpop.f32.mrf.mxu1  ;;  %v542_v61 = vrot.slane %v441_v54, 7  ;;  %v1691_v54 = vld [vmem:[%s2089_s6 + $0x48] sm:$0xff] }
  0xaa   : > { %v611_v2 = vrot.slane %v537_v55, 1  ;;  %v1682_v55 = vld [vmem:[%s2089_s6] sm:$0xff]  ;;  %1136 = vmatpush.bf16.msra.mxu0 %v1691_v54 }
  0xab   : > { %973 = vmatpush.bf16.msrb.mxu2 %v1682_v55 }
  0xb0   : > { %v606_v58 = vpop.f32.mrf.mxu2  ;;  %v443_v59 = vpop.f32.mrf.mxu0 }
  0xb1   : > { %v539_v60 = vpop.f32.mrf.mxu1  ;;  %v543_v0 = vrot.slane %v443_v59, 7 }
  0xb2   : > { %v612_v1 = vrot.slane %v539_v60, 1 }
  0xb3   : > { %v546_v3 = vsel %vm544_vm1, %v543_v0, %v542_v61  ;;  %v545_v12 = vsel %vm544_vm1, %v542_v61, %v543_v0 }
  0xb4   : > { %v547_v5 = vmul.f32 %v1949_v63, %v546_v3  ;;  %v615_v6 = vsel %vm613_vm2, %v612_v1, %v611_v2  ;;  %v614_v11 = vsel %vm613_vm2, %v611_v2, %v612_v1 }
  0xb5   : > { %v617_v16 = vmul.f32 %v1957_v7, %v615_v6 }
  0xb6   : > { %v607_v8 = vadd.f32 %v606_v58, %v547_v5  ;;  %v1690_v58 = vld [vmem:[%s2089_s6 + $0x40] sm:$0xff] }
  0xb7   : > { %1137 = vmatpush.bf16.msra.mxu0 %v1690_v58 }
  0xb8   : > { %v608_v13 = vpop.f32.mrf.mxu2  ;;  %v618_v14 = vadd.f32 %v614_v11, %v607_v8 }
  0xb9   : > { %v609_v15 = vadd.f32 %v608_v13, %v545_v12  ;;  %v1723_v13 = vld [vmem:[%s2088_s5] ss:$0 sm:$0xff] }
  0xba   : > { %v624_v19 = vadd.f32 %v1722_v9, %v618_v14 }
  0xbb   : > { %v619_v18 = vadd.f32 %v617_v16, %v609_v15 }
  0xbc   : > { %v626_v23 = vmax.f32 %v624_v19, 0.0 }
  0xbd   : > { %v625_v21 = vadd.f32 %v1722_v9, %v619_v18 }
  0xbe   : > { %v628_v26 = vpack.c.bf16 %v626_v23, %v626_v23 }
  0xbf   : > { %v627_v24 = vmax.f32 %v625_v21, 0.0 }
  0xc0   : > { %v630_v29 = vunpack.c.l.bf16 %v628_v26 }
  0xc1   : > { %v629_v27 = vpack.c.bf16 %v627_v24, %v627_v24 }
  0xc2   : > { %v634_v31 = vmul.f32 %v1967_v25, %v630_v29 }
  0xc3   : > { %v631_v30 = vunpack.c.l.bf16 %v629_v27 }
  0xc5   : > { %v635_v32 = vmul.f32 %v1969_v28, %v631_v30 }
  0xc7   : > { %v636_v33 = vpack.c.bf16 %v635_v32, %v634_v31 }
  0xc9   : > { %709 = vmatmul.bf16.vlgmr.msra.gmra.mxu3 %v636_v33  ;;  %805 = vmatmul.bf16.vlgmr.msrb.gmra.mxu0 %v636_v33 }
  0xca   : > { %873 = vmatmul.bf16.vlgmr.msrb.gmra.mxu1 %v636_v33 }
 0x146   : > { %v806_v59 = vpop.f32.mrf.mxu0 }
 0x147   : > { %v874_v61 = vpop.f32.mrf.mxu1  ;;  %v879_v1 = vrot.slane %v806_v59, 1 }
 0x14c   : > { %v710_v60 = vpop.f32.mrf.mxu3 }
 0x14d   : > { %v811_v3 = vrot.slane %v710_v60, 7 }
 0x14e   : > { %v808_v62 = vpop.f32.mrf.mxu0 }
 0x14f   : > { %v880_v0 = vrot.slane %v808_v62, 1  ;;  %v876_v6 = vpop.f32.mrf.mxu1 }
 0x151   : > { %v882_v4 = vsel %vm613_vm2, %v880_v0, %v879_v1  ;;  %v881_v16 = vsel %vm613_vm2, %v879_v1, %v880_v0 }
 0x152   : > { %v884_v10 = vmul.f32 %v1957_v7, %v882_v4 }
 0x154   : > { %v712_v2 = vpop.f32.mrf.mxu3 }
 0x155   : > { %v812_v5 = vrot.slane %v712_v2, 7 }
 0x157   : > { %v813_v8 = vsel %vm544_vm1, %v811_v3, %v812_v5  ;;  %v814_v9 = vsel %vm544_vm1, %v812_v5, %v811_v3 }
 0x158   : > { %v815_v11 = vmul.f32 %v1949_v63, %v814_v9  ;;  %v877_v12 = vadd.f32 %v876_v6, %v813_v8 }
 0x15a   : > { %v875_v14 = vadd.f32 %v874_v61, %v815_v11  ;;  %v886_v15 = vadd.f32 %v884_v10, %v877_v12 }
 0x15c   : > { %v885_v17 = vadd.f32 %v881_v16, %v875_v14  ;;  %v892_v18 = vadd.f32 %v1723_v13, %v886_v15 }
 0x15e   : > { %v891_v19 = vadd.f32 %v1723_v13, %v885_v17  ;;  %v894_v20 = vmax.f32 %v892_v18, 0.0 }
 0x160   : > { %v893_v21 = vmax.f32 %v891_v19, 0.0  ;;  %v896_v22 = vpack.c.bf16 %v894_v20, %v894_v20 }
 0x162   : > { %v895_v23 = vpack.c.bf16 %v893_v21, %v893_v21  ;;  %v898_v24 = vunpack.c.l.bf16 %v896_v22 }
 0x164   : > { %v897_v26 = vunpack.c.l.bf16 %v895_v23  ;;  %v900_v29 = vmul.f32 %v898_v24, %v1969_v28 }
 0x166   : > { %v899_v27 = vmul.f32 %v897_v26, %v1967_v25 }
 0x168   : > { %v901_v30 = vpack.c.bf16 %v900_v29, %v899_v27 }
 0x16a   : > { %974 = vmatmul.bf16.vlgmr.msrb.gmra.mxu2 %v901_v30  ;;  %1070 = vmatmul.bf16.vlgmr.msrb.gmra.mxu3 %v901_v30 }
 0x16b   : > { %1138 = vmatmul.bf16.vlgmr.msra.gmra.mxu0 %v901_v30 }
 0x1e8   : > { %v1139_v33 = vpop.f32.mrf.mxu0 }
 0x1ed   : > { %v975_v31 = vpop.f32.mrf.mxu2  ;;  %v1071_v32 = vpop.f32.mrf.mxu3 }
 0x1ee   : > { %v1076_v36 = vrot.slane %v975_v31, 7  ;;  %v1144_v37 = vrot.slane %v1071_v32, 1 }
 0x1f0   : > { %v1141_v40 = vpop.f32.mrf.mxu0 }
 0x1f5   : > { %v977_v34 = vpop.f32.mrf.mxu2  ;;  %v1073_v35 = vpop.f32.mrf.mxu3 }
 0x1f6   : > { %v1077_v38 = vrot.slane %v977_v34, 7  ;;  %v1145_v39 = vrot.slane %v1073_v35, 1 }
 0x1f8   : > { %v1078_v41 = vsel %vm544_vm1, %v1076_v36, %v1077_v38  ;;  %v1079_v42 = vsel %vm544_vm1, %v1077_v38, %v1076_v36  ;;  %v1147_v43 = vsel %vm613_vm2, %v1145_v39, %v1144_v37  ;;  %v1146_v50 = vsel %vm613_vm2, %v1144_v37, %v1145_v39 }
 0x1f9   : > { %v1080_v44 = vmul.f32 %v1949_v63, %v1079_v42  ;;  %v1142_v45 = vadd.f32 %v1141_v40, %v1078_v41  ;;  %v1149_v46 = vmul.f32 %v1957_v7, %v1147_v43 }
 0x1fb   : > { %v1140_v48 = vadd.f32 %v1139_v33, %v1080_v44  ;;  %v1151_v49 = vadd.f32 %v1149_v46, %v1142_v45 }
 0x1fd   : > { %v1150_v51 = vadd.f32 %v1146_v50, %v1140_v48  ;;  %v1157_v52 = vadd.f32 %v1724_v47, %v1151_v49 }
 0x1ff   : > { %v1156_v53 = vadd.f32 %v1724_v47, %v1150_v51  ;;  %v1159_v7 = vmul.f32 %v1157_v52, %v1969_v28 }
 0x201   : > { %v1158_v63 = vmul.f32 %v1156_v53, %v1967_v25  ;;  %1161 = vst [vmem:[%s329_s15 + $0x8] sm:$0xff] %v1159_v7 }
 0x203   : > { %1160 = vst [vmem:[%s329_s15] sm:$0xff] %v1158_v63 }
 0x204 PF: > { %s18_s27 = sadd.s32 1, %s1731_s27  }
 0x205   : > { %p15_p4 = scmp.ge.s32.totalorder %s18_s27, 6  }
 0x207   :  { %17 = sbr.rel (!%p15_p4) target bundleno = 1 (0x1), region = 91 }

</bundles_post_ra>
